<compile_context>
chip_gen: v6e
topology: v6e:2x2x1
jax: 0.10.0
libtpu: 0.0.40
codegen_flags: <defaults>
</compile_context>

<pallas_src>
import jax
import jax.numpy as jnp
from jax import lax
from jax.experimental import pallas as pl
from jax.experimental.pallas import tpu as pltpu


def conv1x1_gemv_kernel(x_ref, w_ref, b_ref, o_ref):
    # x_ref: (1, Cin)   w_ref: (Cout, Cin)   b_ref: (1, Cout)   o_ref: (1, Cout)
    # NT matmul on the MXU: contract Cin of x with Cin of W -> (1, Cout), f32 acc.
    acc = lax.dot_general(
        x_ref[...],
        w_ref[...],
        dimension_numbers=(((1,), (1,)), ((), ())),
        preferred_element_type=jnp.float32,
    )
    o_ref[...] = (acc + b_ref[...]).astype(o_ref.dtype)


def conv2d_1x1(x_nchw, weight, bias):
    """1x1 conv, stride 1, no padding, specialized to the module's N*H*W == 1 case.

    x_nchw : (N, Cin, H, W) with N*H*W == 1
    weight : (Cout, Cin, 1, 1)   (natural PyTorch Conv2d layout, used as-is)
    bias   : (Cout,)
    returns: (N, Cout, H, W)
    """
    N, Cin, H, W = x_nchw.shape
    Cout = weight.shape[0]
    assert N * H * W == 1, "kernel is specialized to the module's 1x1 spatial, batch 1"

    x_row = x_nchw.reshape(1, Cin)      # free reshape (H=W=1, no transpose)
    w_mat = weight.reshape(Cout, Cin)   # free reshape, natural PyTorch layout
    b_row = bias.reshape(1, Cout)       # lane-dense bias row (one vreg)

    itemsize = jnp.dtype(x_row.dtype).itemsize
    cost = pl.CostEstimate(
        flops=2 * Cout * Cin,
        bytes_accessed=(Cin + Cout * Cin + Cout + Cout) * itemsize,
        transcendentals=0,
    )

    out_row = pl.pallas_call(
        conv1x1_gemv_kernel,
        out_shape=jax.ShapeDtypeStruct((1, Cout), x_row.dtype),
        in_specs=[
            pl.BlockSpec(memory_space=pltpu.MemorySpace.VMEM),
            pl.BlockSpec(memory_space=pltpu.MemorySpace.VMEM),
            pl.BlockSpec(memory_space=pltpu.MemorySpace.VMEM),
        ],
        out_specs=pl.BlockSpec(memory_space=pltpu.MemorySpace.VMEM),
        cost_estimate=cost,
    )(x_row, w_mat, b_row)

    # (1, Cout) -> (N, Cout, H, W): pure row-major reshape, no transpose.
    return out_row.reshape(N, Cout, H, W)


if __name__ == "__main__":
    key = jax.random.PRNGKey(0)
    k_x, k_w, k_b = jax.random.split(key, 3)

    N, Cin, H, W = 1, 1200, 1, 1
    Cout = 50

    # Deterministic synthetic parameters (PyTorch-like uniform init scale).
    x = jax.random.normal(k_x, (N, Cin, H, W), dtype=jnp.float32)
    fan_in = Cin * 1 * 1
    bound = 1.0 / (fan_in ** 0.5)
    weight = jax.random.uniform(
        k_w, (Cout, Cin, 1, 1), minval=-bound, maxval=bound, dtype=jnp.float32
    )
    bias = jax.random.uniform(
        k_b, (Cout,), minval=-bound, maxval=bound, dtype=jnp.float32
    )

    conv = jax.jit(conv2d_1x1)
    out = jax.block_until_ready(conv(x, weight, bias))

    # Reference check against plain JAX (same math: GEMV + bias).
    ref = (weight.reshape(Cout, Cin) @ x.reshape(Cin) + bias).reshape(N, Cout, H, W)
    assert out.shape == (N, Cout, H, W)
    assert jnp.allclose(out, ref, atol=1e-4, rtol=1e-4)

    print("KERNEL_OK")
</pallas_src>

<mosaic_0001>
module attributes {stable_mosaic.version = 11 : i64} {
  func.func @conv1x1_gemv_kernel(%arg0: memref<1x1200xf32, #tpu.memory_space<vmem>>, %arg1: memref<50x1200xf32, #tpu.memory_space<vmem>>, %arg2: memref<1x50xf32, #tpu.memory_space<vmem>>, %arg3: memref<1x50xf32, #tpu.memory_space<vmem>>) attributes {dimension_semantics = [], scalar_prefetch = 0 : i64, scratch_operands = 0 : i64, tpu.core_type = #tpu.core_type<tc>} {
    %c0 = arith.constant 0 : index
    %c0_0 = arith.constant 0 : index
    %0 = vector.load %arg0[%c0, %c0_0] : memref<1x1200xf32, #tpu.memory_space<vmem>>, vector<1x1200xf32>
    %c0_1 = arith.constant 0 : index
    %c0_2 = arith.constant 0 : index
    %1 = vector.load %arg1[%c0_1, %c0_2] : memref<50x1200xf32, #tpu.memory_space<vmem>>, vector<50x1200xf32>
    %cst = arith.constant dense<0.000000e+00> : vector<1x50xf32>
    %2 = tpu.matmul %0, %1, %cst {dimension_numbers = #tpu.dot_dimension_numbers<[1], [1], [0], [0], [0, 0, 1, 0], [], []>} : vector<1x1200xf32>, vector<50x1200xf32>, vector<1x50xf32> -> vector<1x50xf32>
    %c0_3 = arith.constant 0 : index
    %c0_4 = arith.constant 0 : index
    %3 = vector.load %arg2[%c0_3, %c0_4] : memref<1x50xf32, #tpu.memory_space<vmem>>, vector<1x50xf32>
    %4 = arith.addf %2, %3 : vector<1x50xf32>
    %c0_5 = arith.constant 0 : index
    %c0_6 = arith.constant 0 : index
    %5 = vector.load %arg3[%c0_5, %c0_6] : memref<1x50xf32, #tpu.memory_space<vmem>>, vector<1x50xf32>
    tpu.vector_store %arg3[%c0_5, %c0_6], %4 {strides = array<i32>} : memref<1x50xf32, #tpu.memory_space<vmem>>, vector<1x50xf32>,
    return
  }
}

</mosaic_0001>

<bundles_post_ra>
// kernel: conv2d_1x1.1
= control target key start
LH: loop header
LB: loop body
LE: loop exit
PB: predicated region body
PF: predicated region fallthrough
CT: control target
= control target key end

     0   :  { %v90_v3 = vlaneseq  ;;  %s839_s0 = inlined_call_operand.vmem [shape: f32[1,1200], index: 0, kind: input, shape index: {}]   ;;  %s840_s1 = inlined_call_operand.vmem [shape: f32[50,1200], index: 1, kind: input, shape index: {}]   ;;  %s841_s2 = inlined_call_operand.vmem [shape: f32[1,50], index: 2, kind: input, shape index: {}]   ;;  %s842_s3 = inlined_call_operand.hbm [shape: f32[1,50], index: 3, kind: output, shape index: {}]  }
   0x1   :  { %v78_v0 = vld [vmem:[%s840_s1 + $0x1e8] sm:$0x3]  ;;  %v77_v1 = vld [vmem:[%s840_s1 + $0x1e0] sm:$0x3]  ;;  %v80_v2 = vld [vmem:[%s840_s1 + $0x1f8] sm:$0x3] }
   0x2   :  { %181 = vmatprep.subr.mxu0 %v78_v0  ;;  %251 = vmatprep.subr.mxu1 %v80_v2  ;;  %v79_v4 = vld [vmem:[%s840_s1 + $0x1f0] sm:$0x3]  ;;  %v68_v5 = vld [vmem:[%s840_s1 + $0x198] sm:$0xff]  ;;  %v70_v6 = vld [vmem:[%s840_s1 + $0x1a8] sm:$0xff]  ;;  %v599_v7 = vshrl.u32 %v90_v3, 7 }
   0x3   :  { %182 = vmatpush1.xpose.msra.mxu0 %v77_v1  ;;  %252 = vmatpush1.xpose.msra.mxu1 %v79_v4  ;;  %v67_v8 = vld [vmem:[%s840_s1 + $0x190] sm:$0xff]  ;;  %v69_v9 = vld [vmem:[%s840_s1 + $0x1a0] sm:$0xff]  ;;  %v58_v10 = vld [vmem:[%s840_s1 + $0x148] sm:$0xff] }
   0x4   :  { %183 = vmatprep.subr.mxu0 %v68_v5  ;;  %253 = vmatprep.subr.mxu1 %v70_v6  ;;  %v60_v11 = vld [vmem:[%s840_s1 + $0x158] sm:$0xff]  ;;  %v96_v12 = vsub.s32 1, %v599_v7  ;;  %v57_v13 = vld [vmem:[%s840_s1 + $0x140] sm:$0xff]  ;;  %v59_v14 = vld [vmem:[%s840_s1 + $0x150] sm:$0xff]  ;;  %v104_v15 = vsub.s32 3, %v599_v7  ;;  %v92_v33 = vsub.s32 0, %v599_v7 }
   0x5   :  { %v48_v16 = vld [vmem:[%s840_s1 + $0xf8] sm:$0xff]  ;;  %v50_v17 = vld [vmem:[%s840_s1 + $0x108] sm:$0xff]  ;;  %v630_v18 = vld [vmem:[%s839_s0] sm:$0xff]  ;;  %v100_v34 = vsub.s32 2, %v599_v7  ;;  %v112_v37 = vsub.s32 5, %v599_v7  ;;  %v120_v38 = vsub.s32 7, %v599_v7 }
   0x6   :  { %v97_v19 = vrot.slane %v630_v18, %v96_v12  ;;  %v47_v20 = vld [vmem:[%s840_s1 + $0xf0] sm:$0xff]  ;;  %v49_v21 = vld [vmem:[%s840_s1 + $0x100] sm:$0xff]  ;;  %v105_v22 = vrot.slane %v630_v18, %v104_v15  ;;  %v38_v23 = vld [vmem:[%s840_s1 + $0xa8] sm:$0xff] }
   0x7   :  { %184 = vmatpush1.xpose.msra.mxu0 %v67_v8  ;;  %254 = vmatpush1.xpose.msra.mxu1 %v69_v9  ;;  %v40_v24 = vld [vmem:[%s840_s1 + $0xb8] sm:$0xff]  ;;  %v37_v25 = vld [vmem:[%s840_s1 + $0xa0] sm:$0xff]  ;;  %v39_v26 = vld [vmem:[%s840_s1 + $0xb0] sm:$0xff] }
   0x8   :  { %185 = vmatprep.subr.mxu0 %v58_v10  ;;  %255 = vmatprep.subr.mxu1 %v60_v11  ;;  %v28_v27 = vld [vmem:[%s840_s1 + $0x58] sm:$0xff]  ;;  %v30_v28 = vld [vmem:[%s840_s1 + $0x68] sm:$0xff]  ;;  %v27_v29 = vld [vmem:[%s840_s1 + $0x50] sm:$0xff] }
   0x9   :  { %227 = vmatprep.mubr.f32.mxu0 %v97_v19  ;;  %297 = vmatprep.mubr.f32.mxu1 %v105_v22  ;;  %v29_v30 = vld [vmem:[%s840_s1 + $0x60] sm:$0xff]  ;;  %v18_v31 = vld [vmem:[%s840_s1 + $0x8] sm:$0xff]  ;;  %v20_v32 = vld [vmem:[%s840_s1 + $0x18] sm:$0xff] }
   0xa   :  { %v17_v35 = vld [vmem:[%s840_s1] sm:$0xff]  ;;  %v19_v36 = vld [vmem:[%s840_s1 + $0x10] sm:$0xff]  ;;  %v82_v39 = vld [vmem:[%s840_s1 + $0x208] sm:$0x3] }
   0xb   :  { %186 = vmatpush1.xpose.msra.mxu0 %v57_v13  ;;  %256 = vmatpush1.xpose.msra.mxu1 %v59_v14  ;;  %v84_v40 = vld [vmem:[%s840_s1 + $0x218] sm:$0x3] }
   0xc   :  { %187 = vmatprep.subr.mxu0 %v48_v16  ;;  %257 = vmatprep.subr.mxu1 %v50_v17 }
   0xf   :  { %188 = vmatpush1.xpose.msra.mxu0 %v47_v20  ;;  %258 = vmatpush1.xpose.msra.mxu1 %v49_v21 }
  0x10   :  { %189 = vmatprep.subr.mxu0 %v38_v23  ;;  %259 = vmatprep.subr.mxu1 %v40_v24 }
  0x13   :  { %190 = vmatpush1.xpose.msra.mxu0 %v37_v25  ;;  %260 = vmatpush1.xpose.msra.mxu1 %v39_v26 }
  0x14   :  { %191 = vmatprep.subr.mxu0 %v28_v27  ;;  %261 = vmatprep.subr.mxu1 %v30_v28 }
  0x17   :  { %192 = vmatpush1.xpose.msra.mxu0 %v27_v29  ;;  %262 = vmatpush1.xpose.msra.mxu1 %v29_v30 }
  0x18   :  { %193 = vmatprep.subr.mxu0 %v18_v31  ;;  %263 = vmatprep.subr.mxu1 %v20_v32 }
  0x19   :  { %8 = vsyncpa [#allocation3], 0  ;;  %v93_v41 = vrot.slane %v630_v18, %v92_v33  ;;  %v101_v42 = vrot.slane %v630_v18, %v100_v34  ;;  %v81_v43 = vld [vmem:[%s840_s1 + $0x200] sm:$0x3]  ;;  %v83_v44 = vld [vmem:[%s840_s1 + $0x210] sm:$0x3]  ;;  %v113_v47 = vrot.slane %v630_v18, %v112_v37  ;;  %v121_v48 = vrot.slane %v630_v18, %v120_v38 }
  0x1a   :  { %v72_v45 = vld [vmem:[%s840_s1 + $0x1b8] sm:$0xff]  ;;  %v74_v46 = vld [vmem:[%s840_s1 + $0x1c8] sm:$0xff]  ;;  %v71_v49 = vld [vmem:[%s840_s1 + $0x1b0] sm:$0xff]  ;;  %v108_v5 = vsub.s32 4, %v599_v7  ;;  %v116_v6 = vsub.s32 6, %v599_v7  ;;  %vm139_vm0 = vcmask 392192  }
  0x1b   :  { %194 = vmatpush1.xpose.msra.mxu0 %v17_v35  ;;  %264 = vmatpush1.xpose.msra.mxu1 %v19_v36  ;;  %v73_v50 = vld [vmem:[%s840_s1 + $0x1c0] sm:$0xff]  ;;  %v62_v51 = vld [vmem:[%s840_s1 + $0x168] sm:$0xff]  ;;  %v64_v52 = vld [vmem:[%s840_s1 + $0x178] sm:$0xff]  ;;  %vm513_vm1 = vcmask 401408  }
  0x1c   :  { %321 = vmatprep.subr.mxu0 %v82_v39  ;;  %391 = vmatprep.subr.mxu1 %v84_v40  ;;  %v61_v53 = vld [vmem:[%s840_s1 + $0x160] sm:$0xff]  ;;  %v63_v54 = vld [vmem:[%s840_s1 + $0x170] sm:$0xff]  ;;  %v52_v55 = vld [vmem:[%s840_s1 + $0x118] sm:$0xff]  ;;  %v109_v13 = vrot.slane %v630_v18, %v108_v5  ;;  %v117_v14 = vrot.slane %v630_v18, %v116_v6 }
  0x1d   :  { %v54_v56 = vld [vmem:[%s840_s1 + $0x128] sm:$0xff]  ;;  %v51_v57 = vld [vmem:[%s840_s1 + $0x110] sm:$0xff]  ;;  %v53_v58 = vld [vmem:[%s840_s1 + $0x120] sm:$0xff] }
  0x1e   :  { %228 = vmatmul.mubr.f32.vlgmr.msra.gmra.mxu0 %v93_v41  ;;  %298 = vmatmul.mubr.f32.vlgmr.msra.gmra.mxu1 %v101_v42  ;;  %v42_v59 = vld [vmem:[%s840_s1 + $0xc8] sm:$0xff]  ;;  %v44_v60 = vld [vmem:[%s840_s1 + $0xd8] sm:$0xff]  ;;  %v41_v61 = vld [vmem:[%s840_s1 + $0xc0] sm:$0xff] }
  0x1f   :  { %322 = vmatpush1.xpose.msra.mxu0 %v81_v43  ;;  %392 = vmatpush1.xpose.msra.mxu1 %v83_v44  ;;  %v43_v62 = vld [vmem:[%s840_s1 + $0xd0] sm:$0xff]  ;;  %v32_v63 = vld [vmem:[%s840_s1 + $0x78] sm:$0xff]  ;;  %v34_v0 = vld [vmem:[%s840_s1 + $0x88] sm:$0xff] }
  0x20   :  { %323 = vmatprep.subr.mxu0 %v72_v45  ;;  %393 = vmatprep.subr.mxu1 %v74_v46  ;;  %v31_v1 = vld [vmem:[%s840_s1 + $0x70] sm:$0xff]  ;;  %v33_v2 = vld [vmem:[%s840_s1 + $0x80] sm:$0xff]  ;;  %v22_v3 = vld [vmem:[%s840_s1 + $0x28] sm:$0xff] }
  0x21   :  { %367 = vmatprep.mubr.f32.mxu0 %v113_v47  ;;  %437 = vmatprep.mubr.f32.mxu1 %v121_v48  ;;  %v24_v4 = vld [vmem:[%s840_s1 + $0x38] sm:$0xff]  ;;  %v16_v8 = vld [vmem:[%s839_s0 + $0x8] sm:$0x3]  ;;  %v21_v9 = vld [vmem:[%s840_s1 + $0x20] sm:$0xff] }
  0x22   :  { %v23_v10 = vld [vmem:[%s840_s1 + $0x30] sm:$0xff]  ;;  %v86_v11 = vld [vmem:[%s840_s1 + $0x228] sm:$0x3]  ;;  %v129_v15 = vrot.slane %v16_v8, %v96_v12  ;;  %v85_v16 = vld [vmem:[%s840_s1 + $0x220] sm:$0x3]  ;;  %v125_v28 = vrot.slane %v16_v8, %v92_v33 }
  0x23   :  { %324 = vmatpush1.xpose.msra.mxu0 %v71_v49  ;;  %394 = vmatpush1.xpose.msra.mxu1 %v73_v50  ;;  %v76_v17 = vld [vmem:[%s840_s1 + $0x1d8] sm:$0xff]  ;;  %v75_v12 = vld [vmem:[%s840_s1 + $0x1d0] sm:$0xff]  ;;  %v66_v18 = vld [vmem:[%s840_s1 + $0x188] sm:$0xff] }
  0x24   :  { %325 = vmatprep.subr.mxu0 %v62_v51  ;;  %395 = vmatprep.subr.mxu1 %v64_v52  ;;  %v65_v19 = vld [vmem:[%s840_s1 + $0x180] sm:$0xff]  ;;  %v56_v20 = vld [vmem:[%s840_s1 + $0x138] sm:$0xff]  ;;  %v55_v21 = vld [vmem:[%s840_s1 + $0x130] sm:$0xff] }
  0x25   :  { %v46_v22 = vld [vmem:[%s840_s1 + $0xe8] sm:$0xff]  ;;  %v45_v23 = vld [vmem:[%s840_s1 + $0xe0] sm:$0xff]  ;;  %v36_v24 = vld [vmem:[%s840_s1 + $0x98] sm:$0xff] }
  0x26   :  { %v35_v25 = vld [vmem:[%s840_s1 + $0x90] sm:$0xff]  ;;  %v26_v26 = vld [vmem:[%s840_s1 + $0x48] sm:$0xff]  ;;  %v25_v27 = vld [vmem:[%s840_s1 + $0x40] sm:$0xff]  ;;  %s560_s1 = smov [#allocation2]  }
  0x27   :  { %326 = vmatpush1.xpose.msra.mxu0 %v61_v53  ;;  %396 = vmatpush1.xpose.msra.mxu1 %v63_v54  ;;  %v87_v38 = vld [vmem:[%s841_s2] sm:$0x1]  ;;  %s521_s0 = sshll.u32 %s560_s1, 4  ;;  %s522_s0 = int_to_ptr.vmem [resolvable:$true] %s521_s0 }
  0x28   :  { %327 = vmatprep.subr.mxu0 %v52_v55  ;;  %397 = vmatprep.subr.mxu1 %v54_v56  ;;  %s538_s22 = scalar_lea.vmem %s522_s0, 16  ;;  %s542_s23 = scalar_lea.vmem %s522_s0, 32 }
  0x29   :  { %p539_p0 = scmp.ne.s32.totalorder %s522_s0, %s538_s22  ;;  %p543_p1 = scmp.lt.s32.totalorder %s522_s0, %s522_s0 }
  0x2a   :  { %p544_p2 = scmp.lt.s32.totalorder %s542_s23, %s538_s22 }
  0x2b   :  { %328 = vmatpush1.xpose.msra.mxu0 %v51_v57  ;;  %398 = vmatpush1.xpose.msra.mxu1 %v53_v58 }
  0x2c   :  { %329 = vmatprep.subr.mxu0 %v42_v59  ;;  %399 = vmatprep.subr.mxu1 %v44_v60  ;;  %p545_p3 = por %p544_p2, %p543_p1 }
  0x2e   :  { %p546_p4 = pnand %p545_p3, %p539_p0 }
  0x2f   :  { %330 = vmatpush1.xpose.msra.mxu0 %v41_v61  ;;  %400 = vmatpush1.xpose.msra.mxu1 %v43_v62 }
  0x30   :  { %331 = vmatprep.subr.mxu0 %v32_v63  ;;  %401 = vmatprep.subr.mxu1 %v34_v0 }
  0x33   :  { %332 = vmatpush1.xpose.msra.mxu0 %v31_v1  ;;  %402 = vmatpush1.xpose.msra.mxu1 %v33_v2 }
  0x34   :  { %333 = vmatprep.subr.mxu0 %v22_v3  ;;  %403 = vmatprep.subr.mxu1 %v24_v4 }
  0x37   :  { %334 = vmatpush1.xpose.msra.mxu0 %v21_v9  ;;  %404 = vmatpush1.xpose.msra.mxu1 %v23_v10 }
  0x38   :  { %529 = vmatprep.subr.msk.mxu0 %vm139_vm0, %v86_v11 }
  0x3a   :  { %368 = vmatmul.mubr.f32.vlgmr.msra.gmra.mxu0 %v109_v13  ;;  %438 = vmatmul.mubr.f32.vlgmr.msra.gmra.mxu1 %v117_v14 }
  0x3b   :  { %462 = vmatpush1.xpose.msra.mxu0 %v85_v16  ;;  %536 = vmatprep.mubr.msk.f32.mxu0 %vm139_vm0, %v129_v15 }
  0x3c   :  { %530 = vmatprep.subr.msk.mxu0 %vm139_vm0, %v76_v17 }
  0x3f   :  { %464 = vmatpush1.xpose.msra.mxu0 %v75_v12 }
  0x40   :  { %531 = vmatprep.subr.msk.mxu0 %vm139_vm0, %v66_v18 }
  0x43   :  { %466 = vmatpush1.xpose.msra.mxu0 %v65_v19 }
  0x44   :  { %532 = vmatprep.subr.msk.mxu0 %vm139_vm0, %v56_v20 }
  0x47   :  { %468 = vmatpush1.xpose.msra.mxu0 %v55_v21 }
  0x48   :  { %533 = vmatprep.subr.msk.mxu0 %vm139_vm0, %v46_v22 }
  0x4b   :  { %470 = vmatpush1.xpose.msra.mxu0 %v45_v23 }
  0x4c   :  { %534 = vmatprep.subr.msk.mxu0 %vm139_vm0, %v36_v24 }
  0x4f   :  { %472 = vmatpush1.xpose.msra.mxu0 %v35_v25 }
  0x50   :  { %535 = vmatprep.subr.msk.mxu0 %vm139_vm0, %v26_v26 }
  0x53   :  { %474 = vmatpush1.xpose.msra.mxu0 %v25_v27 }
  0x56   :  { %508 = vmatmul.mubr.f32.vlgmr.msra.gmra.mxu0 %v125_v28 }
  0xde   :  { %v229_v29 = vpop.f32.mrf.mxu0  ;;  %v299_v30 = vpop.f32.mrf.mxu1 }
  0xdf   :  { %v230_v39 = vadd.f32 %v229_v29, %v87_v38 }
  0xe0   :  { %v231_v31 = vpop.f32.mrf.mxu0  ;;  %v301_v32 = vpop.f32.mrf.mxu1 }
  0xe1   :  { %v300_v40 = vadd.f32 %v299_v30, %v230_v39 }
  0xfa   :  { %v369_v34 = vpop.f32.mrf.mxu0  ;;  %v439_v35 = vpop.f32.mrf.mxu1 }
  0xfb   :  { %v370_v41 = vadd.f32 %v369_v34, %v300_v40 }
  0xfc   :  { %v371_v36 = vpop.f32.mrf.mxu0  ;;  %v441_v37 = vpop.f32.mrf.mxu1 }
  0xfd   :  { %v440_v7 = vadd.f32 %v439_v35, %v370_v41 }
 0x116   :  { %v509_v33 = vpop.f32.mrf.mxu0 }
 0x117   :  { %v510_v42 = vadd.f32 %v509_v33, %v440_v7 }
 0x118   :  { %v511_v43 = vpop.f32.mrf.mxu0 }
 0x119   :  { %514 = vst.msk [vmem:[#allocation2] sm:$0x1] %vm513_vm1, %v510_v42 }
 0x11a   :  { %549 = shalt.err (!%p546_p4)
}
 0x11b   :  { %524 = dma.vmem_to_hbm [thread:$0]  %s522_s0, 16, %s842_s3, [#allocation3]  }
 0x11c   :  { %558 = dma.done.wait [#allocation3], 16  }
 0x11d   :  { %559 = vsyncadd [#allocation3], 4294967280 }
 0x11e   :  { %528 = vsyncpa [#allocation3], 1 }

</bundles_post_ra>
